<compile_context>
chip_gen: v5e
topology: v5e:2x2
jax: 0.10.0
libtpu: 0.0.40
codegen_flags: <defaults>
</compile_context>

<pallas_src>
import jax
import jax.numpy as jnp
from jax.experimental import pallas as pl
from jax.experimental.pallas import tpu as pltpu


def _round_up(x: int, m: int) -> int:
    return ((x + m - 1) // m) * m


# ----------------------------------------------------------------------------
# Kernel
# ----------------------------------------------------------------------------
def _mqa_qkv_kernel(x_ref, wq_ref, bq_ref, wk_ref, bk_ref, wv_ref, bv_ref,
                    q_ref, k_ref, v_ref):
    # x_ref : (tm, H)      token tile (activation dtype)
    # wq_ref: (H, tn)      pre-transposed query weight tile [in, out]
    # wk_ref/wv_ref: (H, hd_p)  resident key/value weights [in, out]
    # b*_ref: (1, width)   float32 biases
    # q_ref : (tm, tn)     query output tile
    # k_ref/v_ref: (tm, hd_p)   key/value output tiles (revisited along j)
    x = x_ref[...]

    q = jnp.dot(x, wq_ref[...], preferred_element_type=jnp.float32)
    q_ref[...] = (q + bq_ref[...].astype(jnp.float32)).astype(q_ref.dtype)

    @pl.when(pl.program_id(1) == 0)
    def _():
        k = jnp.dot(x, wk_ref[...], preferred_element_type=jnp.float32)
        k_ref[...] = (k + bk_ref[...].astype(jnp.float32)).astype(k_ref.dtype)
        v = jnp.dot(x, wv_ref[...], preferred_element_type=jnp.float32)
        v_ref[...] = (v + bv_ref[...].astype(jnp.float32)).astype(v_ref.dtype)


# ----------------------------------------------------------------------------
# One-time parameter preparation (call at init / weight-load time, NOT per step)
# ----------------------------------------------------------------------------
def prepare_mqa_kv_projection_params(wq, bq, wkv, bkv, *, compute_dtype=None):
    """Fuse/transpose/pad the Linear weights once.

    wq  : [H, H]        (torch.nn.Linear layout, out x in)
    wkv : [2*hd, H]
    bq  : [H], bkv : [2*hd]
    """
    H = wq.shape[1]
    two_hd = wkv.shape[0]
    head_dim = two_hd // 2
    if compute_dtype is None:
        compute_dtype = wq.dtype

    nq_p = _round_up(H, 128)          # lane-dense query output width
    hd_p = _round_up(head_dim, 128)   # lane-dense key/value output width

    def pad_cols(w, n):
        return w if w.shape[1] == n else jnp.pad(w, ((0, 0), (0, n - w.shape[1])))

    def pad_bias(b, n):
        b = jnp.asarray(b, jnp.float32).reshape(1, -1)
        return b if b.shape[1] == n else jnp.pad(b, ((0, 0), (0, n - b.shape[1])))

    wq_t = pad_cols(jnp.asarray(wq, compute_dtype).T, nq_p)            # [H, nq_p]
    wk_t = pad_cols(jnp.asarray(wkv[:head_dim], compute_dtype).T, hd_p)  # [H, hd_p]
    wv_t = pad_cols(jnp.asarray(wkv[head_dim:], compute_dtype).T, hd_p)  # [H, hd_p]

    return {
        "hidden_size": H,
        "head_dim": head_dim,
        "wq_t": wq_t, "bq": pad_bias(bq, nq_p),
        "wk_t": wk_t, "bk": pad_bias(bkv[:head_dim], hd_p),
        "wv_t": wv_t, "bv": pad_bias(bkv[head_dim:], hd_p),
    }


# ----------------------------------------------------------------------------
# VMEM budget & tile selection
# ----------------------------------------------------------------------------
def _vmem_budget_bytes() -> int:
    cap = None
    try:
        get_info = getattr(pltpu, "get_tpu_info", None)
        if get_info is not None:
            info = get_info()
            for name in ("vmem_capacity_bytes", "vmem_size_bytes", "vmem_bytes"):
                v = getattr(info, name, None)
                if v:
                    cap = int(v)
                    break
    except Exception:
        cap = None
    if not cap:
        cap = 64 << 20  # conservative default: fits every listed generation (per TC)
    # ~20% headroom for compiler-internal scratch; hard cap at 100 MiB.
    return min(int(cap * 0.80), 100 << 20)


def _choose_tiles(M, H, nq_p, hd_p, w_itemsize, budget, tm_req):
    sub = max(8, 32 // max(w_itemsize, 1))    # sublane packing: 8 f32, 16 bf16, 32 i8/fp8
    tm0 = max(sub, min(tm_req, _round_up(M, sub)))

    def est(tm, tn):
        q_part = tm * H + H * tn + tm * tn            # x, Wq^T tile, q out
        kv_part = 2 * (H * hd_p + tm * hd_p)          # Wk^T/Wv^T + k/v out
        bias = 4 * (tn + 2 * hd_p)                    # f32 biases
        return 2 * ((q_part + kv_part) * w_itemsize + bias) + (2 << 20)

    # Prefer full query-weight residency (single HBM weight read), then the
    # largest tile width that divides the padded output width.
    candidates = [nq_p] + [c for c in (1024, 512, 256, 128)
                           if c < nq_p and nq_p % c == 0]
    for tn in candidates:
        tm = tm0
        while True:
            if est(tm, tn) <= budget:
                return tm, tn
            if tm <= sub:
                break
            tm = max(sub, _round_up(tm // 2, sub))
    # TODO(synk): add a K-tiled path (third 'arbitrary' grid axis + f32
    # accumulator scratch) for very large H / f32 weights where even the
    # minimal (sub, 128) tiles overflow the per-core VMEM budget.
    return sub, candidates[-1]


# ----------------------------------------------------------------------------
# Forward
# ----------------------------------------------------------------------------
def mqa_key_value_projection(hidden_states, params, *, tm=512):
    """hidden_states [B, S, H] -> (query [B,S,H], key [B,S,hd], value [B,S,hd])."""
    B, S, H = hidden_states.shape
    wq_t, bq = params["wq_t"], params["bq"]
    wk_t, bk = params["wk_t"], params["bk"]
    wv_t, bv = params["wv_t"], params["bv"]
    head_dim = params["head_dim"]
    nq_p = wq_t.shape[1]
    hd_p = wk_t.shape[1]
    assert wq_t.shape[0] == H

    out_dtype = hidden_states.dtype
    w_itemsize = jnp.dtype(wq_t.dtype).itemsize
    M = B * S

    budget = _vmem_budget_bytes()
    tm, tn = _choose_tiles(M, H, nq_p, hd_p, w_itemsize, budget, tm)

    sub = max(8, 32 // max(w_itemsize, 1))
    # When the query weight is fully VMEM-resident, splitting M costs no extra
    # HBM weight traffic and gives a second TensorCore (v7x) work on small M.
    if tn == nq_p and M >= 2 * sub and _round_up(M, tm) // tm == 1:
        tm = _round_up((M + 1) // 2, sub)

    Mp = _round_up(M, tm)
    x2d = hidden_states.reshape(M, H)
    if Mp != M:
        x2d = jnp.pad(x2d, ((0, Mp - M), (0, 0)))

    grid = (Mp // tm, nq_p // tn)

    q_out, k_out, v_out = pl.pallas_call(
        _mqa_qkv_kernel,
        out_shape=(
            jax.ShapeDtypeStruct((Mp, nq_p), out_dtype),
            jax.ShapeDtypeStruct((Mp, hd_p), out_dtype),
            jax.ShapeDtypeStruct((Mp, hd_p), out_dtype),
        ),
        grid_spec=pltpu.PrefetchScalarGridSpec(
            num_scalar_prefetch=0,
            grid=grid,
            in_specs=[
                pl.BlockSpec((tm, H), lambda i, j: (i, 0)),       # token tile
                pl.BlockSpec((H, tn), lambda i, j: (0, j)),       # Wq^T tile
                pl.BlockSpec((1, tn), lambda i, j: (0, j)),       # bq tile (f32)
                pl.BlockSpec((H, hd_p), lambda i, j: (0, 0)),     # Wk^T (resident)
                pl.BlockSpec((1, hd_p), lambda i, j: (0, 0)),     # bk (f32)
                pl.BlockSpec((H, hd_p), lambda i, j: (0, 0)),     # Wv^T (resident)
                pl.BlockSpec((1, hd_p), lambda i, j: (0, 0)),     # bv (f32)
            ],
            out_specs=(
                pl.BlockSpec((tm, tn), lambda i, j: (i, j)),      # query
                pl.BlockSpec((tm, hd_p), lambda i, j: (i, 0)),    # key (revisit j)
                pl.BlockSpec((tm, hd_p), lambda i, j: (i, 0)),    # value (revisit j)
            ),
        ),
        compiler_params=pltpu.CompilerParams(
            dimension_semantics=("parallel", "arbitrary"),
            vmem_limit_bytes=int(budget),
        ),
    )(x2d, wq_t, bq, wk_t, bk, wv_t, bv)

    # Slice only when padding was actually applied (prod shapes: no copy at all).
    query = q_out if (Mp == M and nq_p == H) else q_out[:M, :H]
    key = k_out if (Mp == M and hd_p == head_dim) else k_out[:M, :head_dim]
    value = v_out if (Mp == M and hd_p == head_dim) else v_out[:M, :head_dim]
    query = query.reshape(B, S, H)
    key = key.reshape(B, S, head_dim)
    value = value.reshape(B, S, head_dim)
    # copy_to_tensor_parallel_region: identity in the forward pass (tp=1 here)
    return query, key, value


if __name__ == "__main__":
    # Small deterministic configuration consistent with the module:
    #   global_hidden_size = 32, head_dim = 8, add_bias = True, B = 2, S = 8
    B, S = 2, 8
    global_hidden_size = 32
    head_dim = 8

    key0 = jax.random.PRNGKey(0)
    k_x, k_wq, k_bq, k_wkv, k_bkv = jax.random.split(key0, 5)

    hidden_states = jax.random.normal(k_x, (B, S, global_hidden_size), dtype=jnp.float32)
    # q_attn: Linear(H, H)   -> weight [H, H], bias [H]
    wq = jax.random.normal(k_wq, (global_hidden_size, global_hidden_size), dtype=jnp.float32) * 0.05
    bq = jax.random.normal(k_bq, (global_hidden_size,), dtype=jnp.float32) * 0.05
    # kv_attn: Linear(H, 2*head_dim) -> weight [2*hd, H], bias [2*hd]
    wkv = jax.random.normal(k_wkv, (2 * head_dim, global_hidden_size), dtype=jnp.float32) * 0.05
    bkv = jax.random.normal(k_bkv, (2 * head_dim,), dtype=jnp.float32) * 0.05

    # One-time weight preparation (init-time), then the forward pass.
    params = prepare_mqa_kv_projection_params(wq, bq, wkv, bkv)
    params = jax.block_until_ready(params)

    query, key, value = mqa_key_value_projection(hidden_states, params)
    jax.block_until_ready((query, key, value))

    # Reference check against plain JAX (same math as the PyTorch module).
    q_ref = hidden_states @ wq.T + bq
    kv_ref = hidden_states @ wkv.T + bkv
    k_ref, v_ref = kv_ref[..., :head_dim], kv_ref[..., head_dim:]
    assert query.shape == (B, S, global_hidden_size)
    assert key.shape == (B, S, head_dim) and value.shape == (B, S, head_dim)
    assert jnp.allclose(query, q_ref, atol=1e-4, rtol=1e-4)
    assert jnp.allclose(key, k_ref, atol=1e-4, rtol=1e-4)
    assert jnp.allclose(value, v_ref, atol=1e-4, rtol=1e-4)

    print("KERNEL_OK")
</pallas_src>

<mosaic_0001>
module attributes {stable_mosaic.version = 11 : i64} {
  func.func @_mqa_qkv_kernel(%arg0: i32, %arg1: i32, %arg2: memref<8x32xf32, #tpu.memory_space<vmem>>, %arg3: memref<32x128xf32, #tpu.memory_space<vmem>>, %arg4: memref<1x128xf32, #tpu.memory_space<vmem>>, %arg5: memref<32x128xf32, #tpu.memory_space<vmem>>, %arg6: memref<1x128xf32, #tpu.memory_space<vmem>>, %arg7: memref<32x128xf32, #tpu.memory_space<vmem>>, %arg8: memref<1x128xf32, #tpu.memory_space<vmem>>, %arg9: memref<8x128xf32, #tpu.memory_space<vmem>>, %arg10: memref<8x128xf32, #tpu.memory_space<vmem>>, %arg11: memref<8x128xf32, #tpu.memory_space<vmem>>) attributes {dimension_semantics = [#tpu.dimension_semantics<parallel>, #tpu.dimension_semantics<arbitrary>], iteration_bounds = array<i64: 2, 1>, scalar_prefetch = 0 : i64, scratch_operands = 0 : i64, tpu.core_type = #tpu.core_type<tc>, window_params = [{transform_indices = @transform_0, window_bounds = array<i64: 8, 32>}, {transform_indices = @transform_1, window_bounds = array<i64: 32, 128>}, {transform_indices = @transform_2, window_bounds = array<i64: 1, 128>}, {pipeline_mode = #tpu.pipeline_mode<synchronous>, transform_indices = @transform_3, window_bounds = array<i64: 32, 128>}, {pipeline_mode = #tpu.pipeline_mode<synchronous>, transform_indices = @transform_4, window_bounds = array<i64: 1, 128>}, {pipeline_mode = #tpu.pipeline_mode<synchronous>, transform_indices = @transform_5, window_bounds = array<i64: 32, 128>}, {pipeline_mode = #tpu.pipeline_mode<synchronous>, transform_indices = @transform_6, window_bounds = array<i64: 1, 128>}, {transform_indices = @transform_7, window_bounds = array<i64: 8, 128>}, {transform_indices = @transform_8, window_bounds = array<i64: 8, 128>}, {transform_indices = @transform_9, window_bounds = array<i64: 8, 128>}]} {
    %c0 = arith.constant 0 : index
    %c0_0 = arith.constant 0 : index
    %0 = vector.load %arg2[%c0, %c0_0] : memref<8x32xf32, #tpu.memory_space<vmem>>, vector<8x32xf32>
    %c0_1 = arith.constant 0 : index
    %c0_2 = arith.constant 0 : index
    %1 = vector.load %arg3[%c0_1, %c0_2] : memref<32x128xf32, #tpu.memory_space<vmem>>, vector<32x128xf32>
    %cst = arith.constant dense<0.000000e+00> : vector<8x128xf32>
    %2 = tpu.matmul %0, %1, %cst {dimension_numbers = #tpu.dot_dimension_numbers<[1], [0], [0], [1], [0, 0, 1, 1], [], []>} : vector<8x32xf32>, vector<32x128xf32>, vector<8x128xf32> -> vector<8x128xf32>
    %c0_3 = arith.constant 0 : index
    %c0_4 = arith.constant 0 : index
    %3 = vector.load %arg4[%c0_3, %c0_4] : memref<1x128xf32, #tpu.memory_space<vmem>>, vector<1x128xf32>
    %4 = vector.broadcast %3 : vector<1x128xf32> to vector<8x128xf32>
    %5 = arith.addf %2, %4 : vector<8x128xf32>
    %c0_5 = arith.constant 0 : index
    %c0_6 = arith.constant 0 : index
    %6 = vector.load %arg9[%c0_5, %c0_6] : memref<8x128xf32, #tpu.memory_space<vmem>>, vector<8x128xf32>
    tpu.vector_store %arg9[%c0_5, %c0_6], %5 {strides = array<i32>} : memref<8x128xf32, #tpu.memory_space<vmem>>, vector<8x128xf32>,
    %c0_i32 = arith.constant 0 : i32
    %7 = arith.cmpi eq, %arg1, %c0_i32 : i32
    %8 = arith.extui %7 : i1 to i32
    %c0_i32_7 = arith.constant 0 : i32
    %9 = arith.cmpi ne, %8, %c0_i32_7 : i32
    scf.if %9 {
      %c0_8 = arith.constant 0 : index
      %c0_9 = arith.constant 0 : index
      %10 = vector.load %arg5[%c0_8, %c0_9] : memref<32x128xf32, #tpu.memory_space<vmem>>, vector<32x128xf32>
      %cst_10 = arith.constant dense<0.000000e+00> : vector<8x128xf32>
      %11 = tpu.matmul %0, %10, %cst_10 {dimension_numbers = #tpu.dot_dimension_numbers<[1], [0], [0], [1], [0, 0, 1, 1], [], []>} : vector<8x32xf32>, vector<32x128xf32>, vector<8x128xf32> -> vector<8x128xf32>
      %c0_11 = arith.constant 0 : index
      %c0_12 = arith.constant 0 : index
      %12 = vector.load %arg6[%c0_11, %c0_12] : memref<1x128xf32, #tpu.memory_space<vmem>>, vector<1x128xf32>
      %13 = vector.broadcast %12 : vector<1x128xf32> to vector<8x128xf32>
      %14 = arith.addf %11, %13 : vector<8x128xf32>
      %c0_13 = arith.constant 0 : index
      %c0_14 = arith.constant 0 : index
      %15 = vector.load %arg10[%c0_13, %c0_14] : memref<8x128xf32, #tpu.memory_space<vmem>>, vector<8x128xf32>
      tpu.vector_store %arg10[%c0_13, %c0_14], %14 {strides = array<i32>} : memref<8x128xf32, #tpu.memory_space<vmem>>, vector<8x128xf32>,
      %c0_15 = arith.constant 0 : index
      %c0_16 = arith.constant 0 : index
      %16 = vector.load %arg7[%c0_15, %c0_16] : memref<32x128xf32, #tpu.memory_space<vmem>>, vector<32x128xf32>
      %cst_17 = arith.constant dense<0.000000e+00> : vector<8x128xf32>
      %17 = tpu.matmul %0, %16, %cst_17 {dimension_numbers = #tpu.dot_dimension_numbers<[1], [0], [0], [1], [0, 0, 1, 1], [], []>} : vector<8x32xf32>, vector<32x128xf32>, vector<8x128xf32> -> vector<8x128xf32>
      %c0_18 = arith.constant 0 : index
      %c0_19 = arith.constant 0 : index
      %18 = vector.load %arg8[%c0_18, %c0_19] : memref<1x128xf32, #tpu.memory_space<vmem>>, vector<1x128xf32>
      %19 = vector.broadcast %18 : vector<1x128xf32> to vector<8x128xf32>
      %20 = arith.addf %17, %19 : vector<8x128xf32>
      %c0_20 = arith.constant 0 : index
      %c0_21 = arith.constant 0 : index
      %21 = vector.load %arg11[%c0_20, %c0_21] : memref<8x128xf32, #tpu.memory_space<vmem>>, vector<8x128xf32>
      tpu.vector_store %arg11[%c0_20, %c0_21], %20 {strides = array<i32>} : memref<8x128xf32, #tpu.memory_space<vmem>>, vector<8x128xf32>,
    } else {
    }
    return
  }
  func.func @transform_0(%arg0: i32, %arg1: i32) -> (i32, i32) {
    %c0_i32 = arith.constant 0 : i32
    %c0_i32_0 = arith.constant 0 : i32
    return %arg0, %c0_i32 : i32, i32
  }
  func.func @transform_1(%arg0: i32, %arg1: i32) -> (i32, i32) {
    %c0_i32 = arith.constant 0 : i32
    %c0_i32_0 = arith.constant 0 : i32
    return %c0_i32, %arg1 : i32, i32
  }
  func.func @transform_2(%arg0: i32, %arg1: i32) -> (i32, i32) {
    %c0_i32 = arith.constant 0 : i32
    %c0_i32_0 = arith.constant 0 : i32
    return %c0_i32, %arg1 : i32, i32
  }
  func.func @transform_3(%arg0: i32, %arg1: i32) -> (i32, i32) {
    %c0_i32 = arith.constant 0 : i32
    %c0_i32_0 = arith.constant 0 : i32
    %c0_i32_1 = arith.constant 0 : i32
    return %c0_i32, %c0_i32_0 : i32, i32
  }
  func.func @transform_4(%arg0: i32, %arg1: i32) -> (i32, i32) {
    %c0_i32 = arith.constant 0 : i32
    %c0_i32_0 = arith.constant 0 : i32
    %c0_i32_1 = arith.constant 0 : i32
    return %c0_i32, %c0_i32_0 : i32, i32
  }
  func.func @transform_5(%arg0: i32, %arg1: i32) -> (i32, i32) {
    %c0_i32 = arith.constant 0 : i32
    %c0_i32_0 = arith.constant 0 : i32
    %c0_i32_1 = arith.constant 0 : i32
    return %c0_i32, %c0_i32_0 : i32, i32
  }
  func.func @transform_6(%arg0: i32, %arg1: i32) -> (i32, i32) {
    %c0_i32 = arith.constant 0 : i32
    %c0_i32_0 = arith.constant 0 : i32
    %c0_i32_1 = arith.constant 0 : i32
    return %c0_i32, %c0_i32_0 : i32, i32
  }
  func.func @transform_7(%arg0: i32, %arg1: i32) -> (i32, i32) {
    %c0_i32 = arith.constant 0 : i32
    return %arg0, %arg1 : i32, i32
  }
  func.func @transform_8(%arg0: i32, %arg1: i32) -> (i32, i32) {
    %c0_i32 = arith.constant 0 : i32
    %c0_i32_0 = arith.constant 0 : i32
    return %arg0, %c0_i32 : i32, i32
  }
  func.func @transform_9(%arg0: i32, %arg1: i32) -> (i32, i32) {
    %c0_i32 = arith.constant 0 : i32
    %c0_i32_0 = arith.constant 0 : i32
    return %arg0, %c0_i32 : i32, i32
  }
}

</mosaic_0001>

<bundles_post_ra>
// kernel: tpu_custom_call.1
= control target key start
LH: loop header
LB: loop body
LE: loop exit
PB: predicated region body
PF: predicated region fallthrough
CT: control target
= control target key end

     0   :  { %s1494_s0 = inlined_call_operand.hbm [shape: f32[16,32], index: 0, kind: input, shape index: {}]   ;;  %s1495_s1 = inlined_call_operand.hbm [shape: f32[32,128], index: 1, kind: input, shape index: {}]   ;;  %s1496_s2 = inlined_call_operand.vmem [shape: f32[1,128], index: 2, kind: input, shape index: {}]   ;;  %s1497_s3 = inlined_call_operand.hbm [shape: f32[32,128], index: 3, kind: input, shape index: {}]   ;;  %s1498_s4 = inlined_call_operand.vmem [shape: f32[1,128], index: 4, kind: input, shape index: {}]   ;;  %s1499_s5 = inlined_call_operand.hbm [shape: f32[32,128], index: 5, kind: input, shape index: {}]   ;;  %s1500_s6 = inlined_call_operand.vmem [shape: f32[1,128], index: 6, kind: input, shape index: {}]   ;;  %s1501_s7 = inlined_call_operand.hbm [shape: f32[16,128], index: 7, kind: output, shape index: {0}]   ;;  %s1502_s8 = inlined_call_operand.hbm [shape: f32[16,128], index: 8, kind: output, shape index: {1}]   ;;  %s1503_s9 = inlined_call_operand.hbm [shape: f32[16,128], index: 9, kind: output, shape index: {2}]  }
   0x1   :  { %1510 = sst [smem:[#allocation23_spill]] %s1494_s0 }
   0x2   :  { %1511 = sst [smem:[#allocation24_spill]] %s1495_s1 }
   0x3   :  { %1512 = sst [smem:[#allocation25_spill]] %s1497_s3 }
   0x4   :  { %1513 = sst [smem:[#allocation26_spill]] %s1499_s5 }
   0x5   :  { %15 = vsyncpa [#allocation3], 0 }
   0x6   :  { %17 = vsyncpa [#allocation3 + $0x1], 0 }
   0x7   :  { %18 = vsyncpa [#allocation6], 0 }
   0x8   :  { %19 = vsyncpa [#allocation9], 0 }
   0x9   :  { %20 = vsyncpa [#allocation4], 0 }
   0xa   :  { %22 = vsyncpa [#allocation4 + $0x1], 0 }
   0xb   :  { %23 = vsyncpa [#allocation12], 0 }
   0xc   :  { %25 = vsyncpa [#allocation12 + $0x1], 0  ;;  %s1253_s30 = smov 0   ;;  %s1255_s10 = smov 0  }
   0xd   :  { %s1257_s11 = smov 0   ;;  %s1259_s12 = smov 0  }
   0xe   :  { %s1261_s13 = smov 0   ;;  %s1263_s14 = smov 0  }
   0xf LB: > { %1514 = sst [smem:[#allocation19_spill]] %s1192_s13  ;;  %s1284_s15 = sadd.s32 4294967295, %s1196_s14   ;;  %s1196_s14 = sphi %s1263_s14, %s31_s14   ;;  %s1192_s13 = sphi %s1261_s13, %s1535_s13   ;;  %s1188_s12 = sphi %s1259_s12, %s1534_s12   ;;  %s1184_s11 = sphi %s1257_s11, %s1538_s11   ;;  %s1180_s10 = sphi %s1255_s10, %s1537_s10   ;;  %s1176_s30 = sphi %s1253_s30, %s1536_s30  }
  0x10   : > { %p791_p0 = scmp.ge.s32.totalorder %s1196_s14, 1  ;;  %p64_p1 = scmp.eq.s32.totalorder %s1284_s15, 0 }
  0x11   : > { %p290_p2 = scmp.lt.s32.totalorder %s1196_s14, 3  ;;  %s1515_s1 = sld [smem:[#allocation24_spill]] }
  0x12   : > { %s1198_s20 = smov [#allocation5]   ;;  %p796_p6 = scmp.ge.s32.totalorder %s1196_s14, 2 }
  0x13   : > { %p1292_p3 = pnand %p791_p0, %p290_p2  ;;  %s305_s21 = sshll.u32 %s1198_s20, 4  ;;  %s306_s21 = int_to_ptr.vmem [resolvable:$true] %s305_s21 }
  0x14   : > { %s1518_s3 = sld [smem:[#allocation25_spill]]  ;;  %s1199_s26 = smov 128  }
  0x15   : > { %p838_p4 = pneg %p1292_p3  ;;  %s1200_s27 = smov 8  }
  0x16   : > { %s1201_s28 = smov [#allocation7]   ;;  %s1519_s5 = sld [smem:[#allocation26_spill]] }
  0x17   : > { %s303_s18 = sshll.u32 %s1515_s1, 4  ;;  %p1300_p5 = pnand %p838_p4, %p64_p1  ;;  %s304_s18 = int_to_ptr.hbm [resolvable:$true] %s303_s18 }
  0x18   : > { %s325_s29 = sshll.u32 %s1201_s28, 4  ;;  %s1202_s23 = smov [#allocation8]   ;;  %s326_s29 = int_to_ptr.vmem [resolvable:$true] %s325_s29 }
  0x19   : > { %841 = dma.hbm_to_vmem [thread:$0]  (!%p1300_p5), %s304_s18, 512, %s306_s21, [#allocation6], %s1199_s26, %s1199_s26, %s1200_s27  }
  0x1a   : > { %s323_s25 = sshll.u32 %s1518_s3, 4  ;;  %s342_s24 = sshll.u32 %s1202_s23, 4  ;;  %s324_s25 = int_to_ptr.hbm [resolvable:$true] %s323_s25  ;;  %s343_s24 = int_to_ptr.vmem [resolvable:$true] %s342_s24 }
  0x1b   : > { %844 = dma.hbm_to_vmem [thread:$0]  (!%p1300_p5), %s324_s25, 512, %s326_s29, [#allocation6], %s1199_s26, %s1199_s26, %s1200_s27  }
  0x1c   : > { %s340_s20 = sshll.u32 %s1519_s5, 4  ;;  %s1504_s18 = sadd.s32 4294967294, %s1196_s14   ;;  %s341_s20 = int_to_ptr.hbm [resolvable:$true] %s340_s20 }
  0x1d   : > { %847 = dma.hbm_to_vmem [thread:$0]  (!%p1300_p5), %s341_s20, 512, %s343_s24, [#allocation9], %s1199_s26, %s1199_s26, %s1200_s27  }
  0x1e   : > { %s43_s21 = sadd.s32 1, %s1192_s13  ;;  %s50_s28 = sadd.s32 1, %s1184_s11 }
  0x1f   : > { %p45_p7 = scmp.ge.s32.totalorder %s43_s21, 2  ;;  %p57_p8 = scmp.ne.s32.totalorder %s1184_s11, %s1180_s10 }
  0x20   : > { %p58_p9 = scmp.eq.s32.totalorder %s1196_s14, 0  ;;  %p63_p10 = scmp.ne.s32.totalorder %s1180_s10, %s1176_s30 }
  0x21   : > { %s1540_s21 = smov (%p45_p7, %s43_s21), 0  ;;  %p225_p13 = scmp.eq.s32.totalorder %s1284_s15, 1 }
  0x22   : > { %1520 = sst [smem:[#allocation20_spill]] %s1540_s21  ;;  %p1327_p11 = por %p58_p9, %p57_p8 }
  0x23   : > { %p1333_p12 = por %p64_p1, %p63_p10  ;;  %s47_s26 = ssub.s32 %s1192_s13, %s1540_s21 }
  0x24   : > { %p48_p0 = scmp.eq.s32.totalorder %s47_s26, 0  ;;  %p231_p2 = scmp.eq.s32.totalorder %s1504_s18, 1 }
  0x25   : > { %p1342_p4 = por %p225_p13, %p57_p8  ;;  %p865_p5 = scmp.lt.s32.totalorder %s1196_s14, 2 }
  0x26   : > { %s1348_s29 = scalar_select %p48_p0, %s1184_s11, %s50_s28  }
  0x27   : > { %p1350_p7 = por %p231_p2, %p63_p10  ;;  %s359_s17 = sand.u32 1, %s1184_s11  }
  0x28   : > { %s797_s20 = sshll.u32 %s359_s17, 3  ;;  %s798_s23 = sshll.u32 %s1192_s13, 3 }
  0x29   : > { %s1525_s0 = sld [smem:[#allocation23_spill]]  ;;  %s363_s3 = scalar_lea.vmem [#allocation2], %s797_s20 }
  0x2a   : > { %s371_s18 = sshll.u32 %s363_s3, 4  ;;  %p849_p8 = pnand %p865_p5, %p1327_p11  ;;  %s372_s18 = int_to_ptr.vmem [resolvable:$true] %s371_s18 }
  0x2b   : > { %s360_s28 = scalar_lea.sflag [#allocation3], %s359_s17 }
  0x2d   : > { %380 = sbr.rel (%p1292_p3) target bundleno = 235 (0xeb), region = 48 }
  0x2f   : > { %s367_s26 = scalar_lea.hbm %s1525_s0, %s798_s23 }
  0x30   : > { %s369_s5 = sshll.u32 %s367_s26, 4  ;;  %s370_s5 = int_to_ptr.hbm [resolvable:$true] %s369_s5 }
  0x31   : > { %851 = dma.hbm_to_vmem [thread:$0]  (!%p849_p8), %s370_s5, 128, %s372_s18, %s360_s28  }
  0x32   : > { %s1364_s21 = sand.u32 1, %s1180_s10  }
  0x33   : > { %s1367_s1 = sshll.u32 %s1364_s21, 3  ;;  %s383_s3 = scalar_lea.sflag [#allocation3], %s1364_s21 }
  0x34   : > { %s386_s20 = scalar_lea.vmem [#allocation2], %s1367_s1 }
  0x35   : > { %1155 = dma.done.wait (%p1333_p12), %s383_s3, 128  }
  0x36   : > { %1157 = vsyncadd (%p1333_p12), %s383_s3, 4294967168 }
  0x37   : > { %1159 = dma.done.wait (%p64_p1), [#allocation6], 1024  }
  0x38   : > { %1161 = vsyncadd (%p64_p1), [#allocation6], 4294966272 }
  0x39   : > { %1163 = dma.done.wait (%p64_p1), [#allocation9], 512  }
  0x3a   : > { %1165 = vsyncadd (%p64_p1), [#allocation9], 4294966784  ;;  %v523_v0 = vld [vmem:[#allocation8 + $0x18] sm:$0xff]  ;;  %v522_v1 = vld [vmem:[#allocation8 + $0x10] sm:$0xff]  ;;  %vm462_vm0 = vcmask 261120   ;;  %s813_s5 = sshll.u32 %s1188_s12, 3 }
  0x3b   : > { %540 = vmatpush.msra.mxu2 %v523_v0  ;;  %v494_v2 = vld [vmem:[#allocation7 + $0x18] sm:$0xff]  ;;  %v521_v4 = vld [vmem:[#allocation8 + $0x8] sm:$0xff]  ;;  %v493_v5 = vld [vmem:[#allocation7 + $0x10] sm:$0xff]  ;;  %s554_s19 = sand.u32 1, %s1284_s15   ;;  %s585_s22 = scalar_lea.hbm %s1502_s8, %s813_s5 }
  0x3c   : > { %v457_v3 = vld [vmem:[#allocation5 + $0x18] sm:$0xff]  ;;  %511 = vmatpush.msra.mxu1 %v494_v2  ;;  %v456_v6 = vld [vmem:[#allocation5 + $0x10] sm:$0xff]  ;;  %v492_v7 = vld [vmem:[#allocation7 + $0x8] sm:$0xff]  ;;  %s571_s24 = scalar_lea.hbm %s1501_s7, %s813_s5  ;;  %s442_s3 = scalar_lea.vmem [#allocation11], %s1367_s1 }
  0x3d   : > { %478 = vmatpush.msra.mxu0 %v457_v3  ;;  %541 = vmatpush.msra.mxu2 %v522_v1  ;;  %v455_v8 = vld [vmem:[#allocation5 + $0x8] sm:$0xff]  ;;  %v520_v9 = vld [vmem:[#allocation8] sm:$0xff]  ;;  %v453_v10 = vld [vmem:[%s386_s20] sm:$0xff]  ;;  %s1395_s20 = sshll.u32 %s442_s3, 4  ;;  %s1400_s12 = sshll.u32 %s585_s22, 4  ;;  %s588_s20 = int_to_ptr.vmem [resolvable:$true] %s1395_s20  ;;  %s590_s12 = int_to_ptr.hbm [resolvable:$true] %s1400_s12 }
  0x3e   : > { %512 = vmatpush.msra.mxu1 %v493_v5  ;;  %v491_v11 = vld [vmem:[#allocation7] sm:$0xff]  ;;  %v923_v13 = vld [vmem:[%s1498_s4] ss:$0 sm:$0xff]  ;;  %s435_s15 = scalar_lea.vmem [#allocation10], %s1367_s1  ;;  %s1405_s25 = sshll.u32 %s571_s24, 4 }
  0x3f   : > { %479 = vmatpush.msra.mxu0 %v456_v6  ;;  %542 = vmatpush.msra.mxu2 %v521_v4  ;;  %v454_v12 = vld [vmem:[#allocation5] sm:$0xff]  ;;  %v924_v14 = vld [vmem:[%s1496_s2] ss:$0 sm:$0xff]  ;;  %s1403_s18 = sshll.u32 %s435_s15, 4  ;;  %1527 = sst [smem:[#allocation22_spill]] %s1405_s25 }
  0x40   : > { %513 = vmatpush.msra.mxu1 %v492_v7  ;;  %1526 = sst [smem:[#allocation21_spill]] %s1403_s18  ;;  %s599_s0 = scalar_lea.hbm %s1503_s9, %s813_s5  ;;  %v925_v19 = vld [vmem:[%s1500_s6] ss:$0 sm:$0xff] }
  0x41   : > { %480 = vmatpush.msra.mxu0 %v455_v8  ;;  %543 = vmatpush.msra.mxu2 %v520_v9  ;;  %s449_s24 = scalar_lea.vmem [#allocation13], %s1367_s1  ;;  %s1422_s28 = sshll.u32 %s599_s0, 4  ;;  %s604_s28 = int_to_ptr.hbm [resolvable:$true] %s1422_s28 }
  0x42   : > { %809 = vmatmul.msk.f32.vlgmr.msra.gmra.mxu2 %vm462_vm0, %v453_v10  ;;  %514 = vmatpush.msra.mxu1 %v491_v11  ;;  %s1420_s26 = sshll.u32 %s449_s24, 4  ;;  %s1424_s5 = scalar_lea.sflag [#allocation12], %s554_s19  ;;  %s602_s26 = int_to_ptr.vmem [resolvable:$true] %s1420_s26 }
  0x43   : > { %481 = vmatpush.msra.mxu0 %v454_v12  ;;  %808 = vmatmul.msk.f32.vlgmr.msra.gmra.mxu1 %vm462_vm0, %v453_v10  ;;  %s1060_s17 = sshra.s32 %s590_s12, 4  ;;  %s1061_s17 = int_to_ptr.hbm [resolvable:$true] %s1060_s17 }
  0x44   : > { %807 = vmatmul.msk.f32.vlgmr.msra.gmra.mxu0 %vm462_vm0, %v453_v10  ;;  %s1062_s23 = scalar_lea.hbm %s1061_s17, 8  ;;  %p1067_p10 = scmp.lt.s32.totalorder %s1061_s17, %s1502_s8 }
  0x45   : > { %p1063_p1 = scmp.ne.s32.totalorder %s1061_s17, %s1062_s23 }
  0x47   : > { %p1064_p3 = pnand %p1063_p1, %p1342_p4 }
  0x49   : > { %p1065_p9 = pneg %p1064_p3 }
  0xc0   : > { %v516_v15 = vpop.f32.mrf.mxu1 }
  0xc1   : > { %v517_v16 = vadd.f32 %v923_v13, %v516_v15  ;;  %v483_v17 = vpop.f32.mrf.mxu0 }
  0xc2   : > { %v484_v18 = vadd.f32 %v924_v14, %v483_v17 }
  0xc3   : > { %519 = vst [vmem:[%s442_s3] sm:$0xff] %v517_v16  ;;  %s1066_s3 = scalar_lea.hbm %s1502_s8, 16 }
  0xc4   : > { %486 = vst [vmem:[%s435_s15] sm:$0xff] %v484_v18  ;;  %p1068_p11 = scmp.lt.s32.totalorder %s1066_s3, %s1062_s23 }
  0xc6   : > { %p1069_p12 = por %p1068_p11, %p1067_p10 }
  0xc8   : > { %p1070_p13 = pnand %p1069_p12, %p1065_p9 }
  0xca   : > { %1073 = shalt.err (!%p1070_p13)
}
  0xcb   : > { %s1528_s19 = sld [smem:[#allocation22_spill]]  ;;  %v545_v20 = vpop.f32.mrf.mxu2  ;;  %s550_s15 = scalar_lea.sflag [#allocation4], %s1364_s21 }
  0xcc   : > { %833 = dma.vmem_to_hbm [thread:$0]  (%p1342_p4), %s588_s20, 128, %s590_s12, %s1424_s5  }
  0xcd   : > { %s1094_s17 = scalar_lea.hbm %s1501_s7, 16 }
  0xd1   : > { %s1529_s0 = int_to_ptr.hbm [resolvable:$true] %s1528_s19 }
  0xd2   : > { %s1088_s13 = sshra.s32 %s1529_s0, 4  ;;  %s1089_s13 = int_to_ptr.hbm [resolvable:$true] %s1088_s13 }
  0xd3   : > { %s1090_s22 = scalar_lea.hbm %s1089_s13, 8  ;;  %p1095_p8 = scmp.lt.s32.totalorder %s1089_s13, %s1501_s7 }
  0xd4   : > { %p1091_p0 = scmp.ne.s32.totalorder %s1089_s13, %s1090_s22  ;;  %p1096_p1 = scmp.lt.s32.totalorder %s1094_s17, %s1090_s22 }
  0xd6   : > { %p1092_p2 = pnand %p1091_p0, %p1342_p4  ;;  %p1097_p3 = por %p1096_p1, %p1095_p8 }
  0xd8   : > { %p1093_p5 = pneg %p1092_p2 }
  0xda   : > { %p1098_p9 = pnand %p1097_p3, %p1093_p5 }
  0xdc   : > { %1101 = shalt.err (!%p1098_p9)
}
  0xdd   : > { %s1530_s21 = smov %s1529_s0  ;;  %s1531_s20 = sld [smem:[#allocation21_spill]]  ;;  %v546_v21 = vadd.f32 %v925_v19, %v545_v20 }
  0xde   : > { %s1116_s0 = sshra.s32 %s604_s28, 4  ;;  %s1122_s18 = scalar_lea.hbm %s1503_s9, 16  ;;  %s1117_s0 = int_to_ptr.hbm [resolvable:$true] %s1116_s0 }
  0xdf   : > { %548 = vst [vmem:[%s449_s24] sm:$0xff] %v546_v21  ;;  %s1118_s13 = scalar_lea.hbm %s1117_s0, 8  ;;  %p1123_p13 = scmp.lt.s32.totalorder %s1117_s0, %s1503_s9 }
  0xe0   : > { %p1119_p10 = scmp.ne.s32.totalorder %s1117_s0, %s1118_s13  ;;  %p1124_p0 = scmp.lt.s32.totalorder %s1122_s18, %s1118_s13 }
  0xe2   : > { %p1120_p11 = pnand %p1119_p10, %p1342_p4  ;;  %p1125_p2 = por %p1124_p0, %p1123_p13 }
  0xe3   : > { %s1532_s12 = int_to_ptr.vmem [resolvable:$true] %s1531_s20 }
  0xe4   : > { %832 = dma.vmem_to_hbm [thread:$0]  (%p1342_p4), %s1532_s12, 128, %s1530_s21, %s550_s15  }
  0xe5   : > { %p1121_p12 = pneg %p1120_p11 }
  0xe7   : > { %p1126_p5 = pnand %p1125_p2, %p1121_p12 }
  0xe9   : > { %1129 = shalt.err (!%p1126_p5)
}
  0xea   : > { %834 = dma.vmem_to_hbm [thread:$0]  (%p1342_p4), %s602_s26, 128, %s604_s28, %s1424_s5  }
  0xeb PF: > { %s615_s1 = sand.u32 1, %s1176_s30   ;;  %p853_p8 = pnand %p796_p6, %p1350_p7 }
  0xec   : > { %s616_s24 = scalar_lea.sflag [#allocation4], %s615_s1 }
  0xed   : > { %p854_p1 = pneg %p853_p8 }
  0xef   : > { %1167 = dma.done.wait (%p854_p1), %s616_s24, 128  }
  0xf0   : > { %1169 = vsyncadd (%p854_p1), %s616_s24, 4294967168  ;;  %s1533_s15 = sadd.s32 4294967294, %s1196_s14  }
  0xf1   : > { %s625_s23 = sand.u32 1, %s1533_s15  }
  0xf2   : > { %s626_s3 = scalar_lea.sflag [#allocation12], %s625_s23 }
  0xf3   : > { %1171 = dma.done.wait (%p854_p1), %s626_s3, 256  }
  0xf4   : > { %1173 = vsyncadd (%p854_p1), %s626_s3, 4294967040  ;;  %s31_s14 = sadd.s32 1, %s1196_s14   ;;  %s1534_s12 = sld [smem:[#allocation19_spill]] }
  0xf5   : > { %p28_p4 = scmp.ge.s32.totalorder %s31_s14, 4   ;;  %s1535_s13 = sld [smem:[#allocation20_spill]] }
  0xf6   : > { %s1536_s30 = smov %s1180_s10  ;;  %s1537_s10 = smov %s1184_s11 }
  0xf7   : > { %s1538_s11 = smov %s1348_s29  ;;  %30 = sbr.rel (!%p28_p4) target bundleno = 15 (0xf), region = 145 }
  0xfc   :  { %642 = vsyncpa [#allocation3], 1 }
  0xfd   :  { %644 = vsyncpa [#allocation3 + $0x1], 1 }
  0xfe   :  { %645 = vsyncpa [#allocation6], 1 }
  0xff   :  { %646 = vsyncpa [#allocation9], 1 }
 0x100   :  { %647 = vsyncpa [#allocation4], 1 }
 0x101   :  { %649 = vsyncpa [#allocation4 + $0x1], 1 }
 0x102   :  { %650 = vsyncpa [#allocation12], 1 }
 0x103   :  { %652 = vsyncpa [#allocation12 + $0x1], 1 }

</bundles_post_ra>
